<compile_context>
chip_gen: v7x
topology: tpu7x:2x2x1
jax: 0.10.0
libtpu: 0.0.40
codegen_flags: <defaults>
</compile_context>

<pallas_src>
import functools

import jax
import jax.numpy as jnp
from jax.experimental import pallas as pl
from jax.experimental.pallas import tpu as pltpu

LANE = 128
SUBLANE = 8
MAX_BATCH_TILE = 256


def _round_up(x, m):
    return ((x + m - 1) // m) * m


# ----------------------------------------------------------------------------
# Pallas kernel: fused MLP (Linear -> ReLU -> ... -> Linear) on one batch tile
# ----------------------------------------------------------------------------
def _mlp_kernel(x_ref, w_ref, b_ref, o_ref, *, in_dims_padded):
    """x_ref:(TB,IN_pad) bf16, w_ref:(sum_in_pad,H_pad) bf16 (stacked layers),
    b_ref:(L,H_pad) f32, o_ref:(TB,H_pad) f32."""
    num_layers = len(in_dims_padded)
    h = x_ref[...]                                  # bf16 -> MXU input
    off = 0
    acc = None
    for i, din in enumerate(in_dims_padded):
        w = w_ref[pl.ds(off, din), :]               # static slice of resident slab
        b = b_ref[pl.ds(i, 1), :]                   # (1, H_pad) f32, broadcasts
        acc = jnp.dot(h, w, preferred_element_type=jnp.float32) + b
        if i < num_layers - 1:
            acc = jnp.maximum(acc, 0.0)             # ReLU in f32 (VPU)
            h = acc.astype(jnp.bfloat16)            # bf16 for next MXU pass
        off += din
    o_ref[...] = acc.astype(o_ref.dtype)


def mlp_pallas(x, weights):
    """Run the fused MLP kernel.

    x: (B, input_dim) float32
    weights: list of (W, b), W:(in, out) f32, b:(1, out) f32  (y = x @ W + b)
    """
    B, in_dim = x.shape
    num_layers = len(weights)
    out_dim = weights[-1][0].shape[1]

    # Lane-dense padded widths.
    H_pad = _round_up(max(w.shape[1] for w, _ in weights), LANE)
    IN_pad = _round_up(in_dim, LANE)
    in_dims_padded = tuple([IN_pad] + [H_pad] * (num_layers - 1))

    # Batch tile: sublane aligned, capped (VMEM-friendly on v7x's 64 MiB too).
    TB = min(MAX_BATCH_TILE, _round_up(B, SUBLANE))
    B_pad = _round_up(B, TB)

    # Pack operands (zero padding is numerically exact).
    x_p = jnp.zeros((B_pad, IN_pad), jnp.bfloat16)
    x_p = x_p.at[:B, :in_dim].set(x.astype(jnp.bfloat16))

    w_rows, b_rows = [], []
    for i, (w, b) in enumerate(weights):
        din, dout = w.shape
        wp = jnp.zeros((in_dims_padded[i], H_pad), jnp.bfloat16)
        wp = wp.at[:din, :dout].set(w.astype(jnp.bfloat16))
        w_rows.append(wp)
        bp = jnp.zeros((1, H_pad), jnp.float32)
        bp = bp.at[:, :dout].set(b.astype(jnp.float32))
        b_rows.append(bp)
    w_slab = jnp.concatenate(w_rows, axis=0)        # (sum_in_pad, H_pad) bf16
    b_slab = jnp.concatenate(b_rows, axis=0)        # (num_layers, H_pad) f32

    kernel = functools.partial(_mlp_kernel, in_dims_padded=in_dims_padded)
    out = pl.pallas_call(
        kernel,
        grid=(B_pad // TB,),
        in_specs=[
            pl.BlockSpec((TB, IN_pad), lambda i: (i, 0)),       # batch tiled
            pl.BlockSpec(w_slab.shape, lambda i: (0, 0)),       # VMEM-resident
            pl.BlockSpec(b_slab.shape, lambda i: (0, 0)),       # VMEM-resident
        ],
        out_specs=pl.BlockSpec((TB, H_pad), lambda i: (i, 0)),
        out_shape=jax.ShapeDtypeStruct((B_pad, H_pad), jnp.float32),
        compiler_params=pltpu.CompilerParams(
            dimension_semantics=("parallel",),
        ),
    )(x_p, w_slab, b_slab)

    return out[:B, :out_dim]


# ----------------------------------------------------------------------------
# Plain-JAX glue: one-hot / embedding with the "-1 means masked" convention.
# TODO(synk): the (sparse) one-hot part of the first Linear could be folded
# into row-gathers of W0 to avoid materializing x; kept as plain-JAX feature
# construction here (it fuses under the jit wrapping the forward).
# ----------------------------------------------------------------------------
def make_one_hot(src, num_classes):
    mask = src == -1
    idx = jnp.where(mask, 0, src)
    oh = jax.nn.one_hot(idx, num_classes, dtype=jnp.float32)
    return jnp.where(mask[..., None], 0.0, oh)


def make_embedding(src, table):
    mask = src == -1
    idx = jnp.where(mask, 0, src)
    emb = jnp.take(table, idx, axis=0)
    return jnp.where(mask[..., None], 0.0, emb)


# ----------------------------------------------------------------------------
# CacheBackbone: parameters + forward
# ----------------------------------------------------------------------------
def init_params(key, latency_dim, victim_acc_dim, action_dim, step_dim,
                window_size, action_embed_dim, step_embed_dim, hidden_dim,
                num_blocks=1):
    input_dim = (latency_dim + victim_acc_dim + action_embed_dim
                 + step_embed_dim) * window_size

    keys = jax.random.split(key, 4 + 2 * (num_blocks + 2))
    params = {}
    # nn.Embedding default init: N(0, 1)
    params["action_embed"] = jax.random.normal(
        keys[0], (action_dim, action_embed_dim), jnp.float32)
    params["step_embed"] = jax.random.normal(
        keys[1], (step_dim, step_embed_dim), jnp.float32)

    # TODO(synk): DNNEncoder source not provided; assumed architecture:
    #   Linear(input, hidden) + ReLU,
    #   num_blocks x (Linear(hidden, hidden) + ReLU),
    #   Linear(hidden, output)   with output_dim == hidden_dim here.
    dims = ([(input_dim, hidden_dim)]
            + [(hidden_dim, hidden_dim)] * num_blocks
            + [(hidden_dim, hidden_dim)])
    mlp = []
    kidx = 2
    for (fan_in, fan_out) in dims:
        bound = 1.0 / jnp.sqrt(jnp.float32(fan_in))
        w = jax.random.uniform(keys[kidx], (fan_in, fan_out), jnp.float32,
                               -bound, bound)
        b = jax.random.uniform(keys[kidx + 1], (1, fan_out), jnp.float32,
                               -bound, bound)
        mlp.append((w, b))
        kidx += 2
    params["mlp"] = mlp
    return params


@functools.partial(jax.jit, static_argnames=("latency_dim", "victim_acc_dim"))
def cache_backbone_forward(params, obs, *, latency_dim, victim_acc_dim):
    # obs: (batch, window, 4) integer observations; -1 marks "no entry".
    assert obs.ndim == 3 and obs.shape[-1] == 4
    obs = obs.astype(jnp.int32)
    batch_size = obs.shape[0]

    l, v, act, step = [obs[..., i] for i in range(4)]
    l = make_one_hot(l, latency_dim)                          # (B, W, Ld)
    v = make_one_hot(v, victim_acc_dim)                       # (B, W, Vd)
    act = make_embedding(act, params["action_embed"])         # (B, W, Ae)
    step = make_embedding(step, params["step_embed"])         # (B, W, Se)

    x = jnp.concatenate((l, v, act, step), axis=-1)           # (B, W, feat)
    x = x.reshape(batch_size, -1)                             # (B, input_dim)

    return mlp_pallas(x, params["mlp"])                       # (B, hidden)


# ----------------------------------------------------------------------------
# Pure-JAX references (correctness checking only)
# ----------------------------------------------------------------------------
def _mlp_reference_bf16(x, weights):
    # Mirrors the kernel's dtype recipe: bf16 MXU inputs, f32 accumulation,
    # f32 bias add + ReLU.
    h = x.astype(jnp.bfloat16)
    acc = None
    for i, (w, b) in enumerate(weights):
        acc = jnp.dot(h, w.astype(jnp.bfloat16),
                      preferred_element_type=jnp.float32) + b
        if i < len(weights) - 1:
            acc = jnp.maximum(acc, 0.0)
            h = acc.astype(jnp.bfloat16)
    return acc


def _mlp_reference_f32(x, weights):
    h = x
    for i, (w, b) in enumerate(weights):
        h = h @ w + b
        if i < len(weights) - 1:
            h = jnp.maximum(h, 0.0)
    return h


if __name__ == "__main__":
    # Small, deterministic configuration.
    latency_dim = 4
    victim_acc_dim = 2
    action_dim = 8
    step_dim = 16
    window_size = 8
    action_embed_dim = 4
    step_embed_dim = 6
    hidden_dim = 32
    num_blocks = 1
    batch = 2
    # input_dim = (4 + 2 + 4 + 6) * 8 = 128

    root = jax.random.PRNGKey(0)
    k_param, k_obs = jax.random.split(root)

    params = init_params(
        k_param, latency_dim, victim_acc_dim, action_dim, step_dim,
        window_size, action_embed_dim, step_embed_dim, hidden_dim, num_blocks)

    # Observations: each of the 4 fields in [-1, dim-1]; -1 means masked slot.
    ks = jax.random.split(k_obs, 4)
    obs = jnp.stack(
        [
            jax.random.randint(ks[0], (batch, window_size), -1, latency_dim),
            jax.random.randint(ks[1], (batch, window_size), -1, victim_acc_dim),
            jax.random.randint(ks[2], (batch, window_size), -1, action_dim),
            jax.random.randint(ks[3], (batch, window_size), -1, step_dim),
        ],
        axis=-1,
    ).astype(jnp.int32)                                        # (2, 8, 4)

    y = cache_backbone_forward(
        params, obs, latency_dim=latency_dim, victim_acc_dim=victim_acc_dim)
    y = jax.block_until_ready(y)

    # Reference of the same forward pass.
    l, v, a, s = [obs[..., i] for i in range(4)]
    x_ref = jnp.concatenate(
        (make_one_hot(l, latency_dim),
         make_one_hot(v, victim_acc_dim),
         make_embedding(a, params["action_embed"]),
         make_embedding(s, params["step_embed"])), axis=-1).reshape(batch, -1)

    y_ref_bf16 = _mlp_reference_bf16(x_ref, params["mlp"])    # same dtype recipe
    y_ref_f32 = _mlp_reference_f32(x_ref, params["mlp"])      # full-precision

    assert y.shape == (batch, hidden_dim)
    assert jnp.allclose(y, y_ref_bf16, atol=2e-4, rtol=2e-4)
    assert jnp.allclose(y, y_ref_f32, atol=5e-2, rtol=0)
    print("KERNEL_OK")
</pallas_src>

<mosaic_0001>
module attributes {stable_mosaic.version = 11 : i64} {
  func.func @_mlp_kernel(%arg0: i32, %arg1: memref<8x128xbf16, #tpu.memory_space<vmem>>, %arg2: memref<384x128xbf16, #tpu.memory_space<vmem>>, %arg3: memref<3x128xf32, #tpu.memory_space<vmem>>, %arg4: memref<8x128xf32, #tpu.memory_space<vmem>>) attributes {dimension_semantics = [#tpu.dimension_semantics<parallel>], iteration_bounds = array<i64: 1>, scalar_prefetch = 0 : i64, scratch_operands = 0 : i64, tpu.core_type = #tpu.core_type<tc>, window_params = [{transform_indices = @transform_0, window_bounds = array<i64: 8, 128>}, {pipeline_mode = #tpu.pipeline_mode<synchronous>, transform_indices = @transform_1, window_bounds = array<i64: 384, 128>}, {pipeline_mode = #tpu.pipeline_mode<synchronous>, transform_indices = @transform_2, window_bounds = array<i64: 3, 128>}, {transform_indices = @transform_3, window_bounds = array<i64: 8, 128>}]} {
    %c0 = arith.constant 0 : index
    %c0_0 = arith.constant 0 : index
    %0 = vector.load %arg1[%c0, %c0_0] : memref<8x128xbf16, #tpu.memory_space<vmem>>, vector<8x128xbf16>
    %c0_1 = arith.constant 0 : index
    %c0_2 = arith.constant 0 : index
    %1 = vector.load %arg2[%c0_1, %c0_2] : memref<384x128xbf16, #tpu.memory_space<vmem>>, vector<128x128xbf16>
    %c0_3 = arith.constant 0 : index
    %c0_4 = arith.constant 0 : index
    %2 = vector.load %arg3[%c0_3, %c0_4] : memref<3x128xf32, #tpu.memory_space<vmem>>, vector<1x128xf32>
    %cst = arith.constant dense<0.000000e+00> : vector<8x128xf32>
    %3 = tpu.matmul %0, %1, %cst {dimension_numbers = #tpu.dot_dimension_numbers<[1], [0], [0], [1], [0, 0, 1, 1], [], []>} : vector<8x128xbf16>, vector<128x128xbf16>, vector<8x128xf32> -> vector<8x128xf32>
    %4 = vector.broadcast %2 : vector<1x128xf32> to vector<8x128xf32>
    %5 = arith.addf %3, %4 : vector<8x128xf32>
    %cst_5 = arith.constant 0.000000e+00 : f32
    %6 = vector.broadcast %cst_5 : f32 to vector<8x128xf32>
    %7 = arith.maximumf %5, %6 : vector<8x128xf32>
    %8 = arith.truncf %7 : vector<8x128xf32> to vector<8x128xbf16>
    %c128 = arith.constant 128 : index
    %c0_6 = arith.constant 0 : index
    %9 = vector.load %arg2[%c128, %c0_6] : memref<384x128xbf16, #tpu.memory_space<vmem>>, vector<128x128xbf16>
    %c1 = arith.constant 1 : index
    %c0_7 = arith.constant 0 : index
    %10 = vector.load %arg3[%c1, %c0_7] : memref<3x128xf32, #tpu.memory_space<vmem>>, vector<1x128xf32>
    %cst_8 = arith.constant dense<0.000000e+00> : vector<8x128xf32>
    %11 = tpu.matmul %8, %9, %cst_8 {dimension_numbers = #tpu.dot_dimension_numbers<[1], [0], [0], [1], [0, 0, 1, 1], [], []>} : vector<8x128xbf16>, vector<128x128xbf16>, vector<8x128xf32> -> vector<8x128xf32>
    %12 = vector.broadcast %10 : vector<1x128xf32> to vector<8x128xf32>
    %13 = arith.addf %11, %12 : vector<8x128xf32>
    %cst_9 = arith.constant 0.000000e+00 : f32
    %14 = vector.broadcast %cst_9 : f32 to vector<8x128xf32>
    %15 = arith.maximumf %13, %14 : vector<8x128xf32>
    %16 = arith.truncf %15 : vector<8x128xf32> to vector<8x128xbf16>
    %c256 = arith.constant 256 : index
    %c0_10 = arith.constant 0 : index
    %17 = vector.load %arg2[%c256, %c0_10] : memref<384x128xbf16, #tpu.memory_space<vmem>>, vector<128x128xbf16>
    %c2 = arith.constant 2 : index
    %c0_11 = arith.constant 0 : index
    %18 = vector.load %arg3[%c2, %c0_11] : memref<3x128xf32, #tpu.memory_space<vmem>>, vector<1x128xf32>
    %cst_12 = arith.constant dense<0.000000e+00> : vector<8x128xf32>
    %19 = tpu.matmul %16, %17, %cst_12 {dimension_numbers = #tpu.dot_dimension_numbers<[1], [0], [0], [1], [0, 0, 1, 1], [], []>} : vector<8x128xbf16>, vector<128x128xbf16>, vector<8x128xf32> -> vector<8x128xf32>
    %20 = vector.broadcast %18 : vector<1x128xf32> to vector<8x128xf32>
    %21 = arith.addf %19, %20 : vector<8x128xf32>
    %c0_13 = arith.constant 0 : index
    %c0_14 = arith.constant 0 : index
    %22 = vector.load %arg4[%c0_13, %c0_14] : memref<8x128xf32, #tpu.memory_space<vmem>>, vector<8x128xf32>
    tpu.vector_store %arg4[%c0_13, %c0_14], %21 {strides = array<i32>} : memref<8x128xf32, #tpu.memory_space<vmem>>, vector<8x128xf32>,
    return
  }
  func.func @transform_0(%arg0: i32) -> (i32, i32) {
    %c0_i32 = arith.constant 0 : i32
    %c0_i32_0 = arith.constant 0 : i32
    return %arg0, %c0_i32 : i32, i32
  }
  func.func @transform_1(%arg0: i32) -> (i32, i32) {
    %c0_i32 = arith.constant 0 : i32
    %c0_i32_0 = arith.constant 0 : i32
    %c0_i32_1 = arith.constant 0 : i32
    return %c0_i32, %c0_i32_0 : i32, i32
  }
  func.func @transform_2(%arg0: i32) -> (i32, i32) {
    %c0_i32 = arith.constant 0 : i32
    %c0_i32_0 = arith.constant 0 : i32
    %c0_i32_1 = arith.constant 0 : i32
    return %c0_i32, %c0_i32_0 : i32, i32
  }
  func.func @transform_3(%arg0: i32) -> (i32, i32) {
    %c0_i32 = arith.constant 0 : i32
    %c0_i32_0 = arith.constant 0 : i32
    return %arg0, %c0_i32 : i32, i32
  }
}

</mosaic_0001>

<bundles_post_ra>
// kernel: cache_backbone_forward.1
= control target key start
LH: loop header
LB: loop body
LE: loop exit
PB: predicated region body
PF: predicated region fallthrough
CT: control target
= control target key end

     0   :  { %v492_v0 = vmov 0.0   ;;  %vm493_vm0 = vmmov 0   ;;  %s631_s1 = inlined_call_operand.vmem [shape: bf16[384,128], index: 1, kind: input, shape index: {}]   ;;  %s632_s0 = inlined_call_operand.vmem [shape: bf16[8,128], index: 0, kind: input, shape index: {}]   ;;  %s633_s2 = inlined_call_operand.vmem [shape: f32[3,128], index: 2, kind: input, shape index: {}]   ;;  %s634_s3 = inlined_call_operand.vmem [shape: f32[8,128], index: 3, kind: output, shape index: {}]  }
   0x1   :  { %406 = vmatprep.subr.bf16.mxu0 %v492_v0  ;;  %v468_v1 = vld [vmem:[%s631_s1] sm:$0xff]   ;;  %422 = vmatprep.mubr.msk.bf16.mxu0 %vm493_vm0, %v492_v0  ;;  %v469_v2 = vld [vmem:[%s631_s1 + $0x8] sm:$0xff]   ;;  %v470_v3 = vld [vmem:[%s631_s1 + $0x10] sm:$0xff]  }
   0x2   :  { %426 = vmatprep.subr.bf16.mxu1 %v492_v0  ;;  %442 = vmatprep.mubr.msk.bf16.mxu1 %vm493_vm0, %v492_v0  ;;  %v476_v4 = vld [vmem:[%s631_s1 + $0x40] sm:$0xff]   ;;  %v471_v5 = vld [vmem:[%s631_s1 + $0x18] sm:$0xff]   ;;  %v477_v6 = vld [vmem:[%s631_s1 + $0x48] sm:$0xff]  }
   0x3   :  { %407 = vmatpush3.bf16.msra.mxu0 %v468_v1  ;;  %427 = vmatpush3.bf16.msra.mxu1 %v476_v4  ;;  %v472_v7 = vld [vmem:[%s631_s1 + $0x20] sm:$0xff]   ;;  %v478_v8 = vld [vmem:[%s631_s1 + $0x50] sm:$0xff]   ;;  %v473_v9 = vld [vmem:[%s631_s1 + $0x28] sm:$0xff]  }
   0x4   :  { %408 = vmatprep.subr.bf16.mxu0 %v492_v0  ;;  %428 = vmatprep.subr.bf16.mxu1 %v492_v0  ;;  %v479_v10 = vld [vmem:[%s631_s1 + $0x58] sm:$0xff]   ;;  %v474_v11 = vld [vmem:[%s631_s1 + $0x30] sm:$0xff]   ;;  %v480_v12 = vld [vmem:[%s631_s1 + $0x60] sm:$0xff]  }
   0x5   :  { %v475_v13 = vld [vmem:[%s631_s1 + $0x38] sm:$0xff]   ;;  %v481_v14 = vld [vmem:[%s631_s1 + $0x68] sm:$0xff]   ;;  %v15_v15 = vld [vmem:[%s632_s0] sm:$0xf] }
   0x6   :  { %v482_v16 = vld [vmem:[%s631_s1 + $0x70] sm:$0xff]   ;;  %v483_v17 = vld [vmem:[%s631_s1 + $0x78] sm:$0xff]   ;;  %v484_v18 = vld [vmem:[%s631_s1 + $0x80] sm:$0xff]  }
   0x7   :  { %409 = vmatpush3.bf16.msra.mxu0 %v469_v2  ;;  %429 = vmatpush3.bf16.msra.mxu1 %v477_v6  ;;  %v485_v19 = vld [vmem:[%s631_s1 + $0x88] sm:$0xff]   ;;  %v486_v20 = vld [vmem:[%s631_s1 + $0x90] sm:$0xff]   ;;  %v487_v21 = vld [vmem:[%s631_s1 + $0x98] sm:$0xff]  }
   0x8   :  { %410 = vmatprep.subr.bf16.mxu0 %v492_v0  ;;  %430 = vmatprep.subr.bf16.mxu1 %v492_v0  ;;  %v488_v22 = vld [vmem:[%s631_s1 + $0xa0] sm:$0xff]   ;;  %v489_v23 = vld [vmem:[%s631_s1 + $0xa8] sm:$0xff]   ;;  %v490_v32 = vld [vmem:[%s631_s1 + $0xb0] sm:$0xff]  }
   0x9   :  { %v352_v24 = vld [vmem:[%s633_s2] ss:$0 sm:$0xff]  ;;  %v491_v33 = vld [vmem:[%s631_s1 + $0xb8] sm:$0xff]   ;;  %v361_v34 = vld [vmem:[%s633_s2 + $0x1] ss:$0 sm:$0xff] }
   0xa   :  { %v370_v42 = vld [vmem:[%s633_s2 + $0x2] ss:$0 sm:$0xff] }
   0xb   :  { %411 = vmatpush3.bf16.msra.mxu0 %v470_v3  ;;  %431 = vmatpush3.bf16.msra.mxu1 %v478_v8 }
   0xc   :  { %412 = vmatprep.subr.bf16.mxu0 %v492_v0  ;;  %432 = vmatprep.subr.bf16.mxu1 %v492_v0 }
   0xf   :  { %413 = vmatpush3.bf16.msra.mxu0 %v471_v5  ;;  %433 = vmatpush3.bf16.msra.mxu1 %v479_v10 }
  0x10   :  { %414 = vmatprep.subr.bf16.mxu0 %v492_v0  ;;  %434 = vmatprep.subr.bf16.mxu1 %v492_v0 }
  0x13   :  { %415 = vmatpush3.bf16.msra.mxu0 %v472_v7  ;;  %435 = vmatpush3.bf16.msra.mxu1 %v480_v12 }
  0x14   :  { %416 = vmatprep.subr.bf16.mxu0 %v492_v0  ;;  %436 = vmatprep.subr.bf16.mxu1 %v492_v0 }
  0x17   :  { %417 = vmatpush3.bf16.msra.mxu0 %v473_v9  ;;  %437 = vmatpush3.bf16.msra.mxu1 %v481_v14 }
  0x18   :  { %418 = vmatprep.subr.bf16.mxu0 %v492_v0  ;;  %438 = vmatprep.subr.bf16.mxu1 %v492_v0 }
  0x1b   :  { %419 = vmatpush3.bf16.msra.mxu0 %v474_v11  ;;  %439 = vmatpush3.bf16.msra.mxu1 %v482_v16 }
  0x1c   :  { %420 = vmatprep.subr.bf16.mxu0 %v492_v0  ;;  %440 = vmatprep.subr.bf16.mxu1 %v492_v0 }
  0x1f   :  { %421 = vmatpush3.bf16.msra.mxu0 %v475_v13  ;;  %441 = vmatpush3.bf16.msra.mxu1 %v483_v17 }
  0x20   :  { %446 = vmatprep.subr.bf16.mxu0 %v492_v0 }
  0x22   :  { %423 = vmatmul.mubr.bf16.vlgmr.msra.gmra.mrb[0].mxu0 %v15_v15 }
  0x23   :  { %462 = vmatprep.mubr.msk.bf16.mxu0 %vm493_vm0, %v492_v0  ;;  %447 = vmatpush3.bf16.msra.mxu0 %v484_v18 }
  0x24   :  { %448 = vmatprep.subr.bf16.mxu0 %v492_v0 }
  0x27   :  { %449 = vmatpush3.bf16.msra.mxu0 %v485_v19 }
  0x28   :  { %450 = vmatprep.subr.bf16.mxu0 %v492_v0 }
  0x2b   :  { %451 = vmatpush3.bf16.msra.mxu0 %v486_v20 }
  0x2c   :  { %452 = vmatprep.subr.bf16.mxu0 %v492_v0 }
  0x2f   :  { %453 = vmatpush3.bf16.msra.mxu0 %v487_v21 }
  0x30   :  { %454 = vmatprep.subr.bf16.mxu0 %v492_v0 }
  0x33   :  { %455 = vmatpush3.bf16.msra.mxu0 %v488_v22 }
  0x34   :  { %456 = vmatprep.subr.bf16.mxu0 %v492_v0 }
  0x37   :  { %457 = vmatpush3.bf16.msra.mxu0 %v489_v23 }
  0x38   :  { %458 = vmatprep.subr.bf16.mxu0 %v492_v0 }
  0x3b   :  { %459 = vmatpush3.bf16.msra.mxu0 %v490_v32 }
  0x3c   :  { %460 = vmatprep.subr.bf16.mxu0 %v492_v0 }
  0x3f   :  { %461 = vmatpush3.bf16.msra.mxu0 %v491_v33 }
  0xf5   :  { %v119_v25 = vpop.f32.mrb[0].mxu0 }
  0xf6   :  { %v120_v26 = vadd.f32 %v352_v24, %v119_v25  ;;  %v424_v27 = vpop.f32.mrb[1].mxu0 }
  0xf7   :  { %v122_v28 = vpop.f32.mrb[2].mxu0 }
  0xf8   :  { %v125_v29 = vmax.f32 %v120_v26, 0.0  ;;  %v425_v30 = vpop.f32.mrb[3].mxu0 }
  0xfa   :  { %v126_v31 = vpack.c.bf16 %v125_v29, %v125_v29 }
  0xfc   :  { %443 = vmatmul.mubr.bf16.vlgmr.msra.gmra.mrb[0].mxu1 %v126_v31 }
 0x1cf   :  { %v230_v35 = vpop.f32.mrb[0].mxu1 }
 0x1d0   :  { %v231_v36 = vadd.f32 %v361_v34, %v230_v35  ;;  %v444_v37 = vpop.f32.mrb[1].mxu1 }
 0x1d1   :  { %v233_v38 = vpop.f32.mrb[2].mxu1 }
 0x1d2   :  { %v236_v39 = vmax.f32 %v231_v36, 0.0  ;;  %v445_v40 = vpop.f32.mrb[3].mxu1 }
 0x1d4   :  { %v237_v41 = vpack.c.bf16 %v236_v39, %v236_v39 }
 0x1d6   :  { %463 = vmatmul.mubr.bf16.vlgmr.msra.gmra.mrb[4].mxu0 %v237_v41 }
 0x2a9   :  { %v341_v43 = vpop.f32.mrb[4].mxu0 }
 0x2aa   :  { %v342_v44 = vadd.f32 %v370_v42, %v341_v43  ;;  %v464_v45 = vpop.f32.mrb[5].mxu0 }
 0x2ab   :  { %v344_v46 = vpop.f32.mrb[6].mxu0 }
 0x2ac   :  { %347 = vst [vmem:[%s634_s3] sm:$0xff] %v342_v44  ;;  %v465_v47 = vpop.f32.mrb[7].mxu0 }

</bundles_post_ra>
